<compile_context>
chip_gen: v7x
topology: tpu7x:2x2x1
jax: 0.10.0
libtpu: 0.0.40
codegen_flags: <defaults>
</compile_context>

<pallas_src>
import functools

import jax
import jax.numpy as jnp
from jax.experimental import pallas as pl
from jax.experimental.pallas import tpu as pltpu

IN_FEATURES = 28 * 28 * 1
LAYER_DIMS = [(IN_FEATURES, 120), (120, 84), (84, 32), (32, 2)]
OUT_FEATURES = LAYER_DIMS[-1][1]
F_PAD = 128  # lane-dense padded width for every hidden/output feature dim


def mlp_kernel(x_ref,
               w1_ref, b1_ref,
               w2_ref, b2_ref,
               w3_ref, b3_ref,
               w4_ref, b4_ref,
               o_ref):
    """One batch tile (TM rows) of the fused 4-layer MLP.

    x_ref: (TM, 784) bf16.  Weights: (in, 128) bf16 (zero-padded).  Biases:
    (1, 128) f32 (zero-padded).  o_ref: (TM, 128) f32.  MXU matmuls accumulate
    in f32; bias add + ReLU stay f32; activations are cast to bf16 only as the
    next matmul's input.
    """
    h = jnp.dot(x_ref[...], w1_ref[...], preferred_element_type=jnp.float32)
    h = jnp.maximum(h + b1_ref[...], 0.0)

    h = jnp.dot(h.astype(jnp.bfloat16), w2_ref[...],
                preferred_element_type=jnp.float32)
    h = jnp.maximum(h + b2_ref[...], 0.0)

    h = jnp.dot(h.astype(jnp.bfloat16), w3_ref[...],
                preferred_element_type=jnp.float32)
    h = jnp.maximum(h + b3_ref[...], 0.0)

    h = jnp.dot(h.astype(jnp.bfloat16), w4_ref[...],
                preferred_element_type=jnp.float32)
    h = h + b4_ref[...]

    o_ref[...] = h.astype(o_ref.dtype)


def _pad2d(a, rows, cols):
    return jnp.pad(a, ((0, rows - a.shape[0]), (0, cols - a.shape[1])))


def pack_params(params):
    """Zero-pad hidden/output dims to 128 and cast weights to bf16.

    Zero weight columns feed zero activations (harmless through ReLU) and the
    matching zero rows of the next layer's weight contribute nothing, so the
    padded network is numerically identical to the original.
    """
    packed = []
    in_dims = [IN_FEATURES, F_PAD, F_PAD, F_PAD]
    for i, in_dim in enumerate(in_dims, start=1):
        w = _pad2d(params[f"w{i}"], in_dim, F_PAD).astype(jnp.bfloat16)
        b = _pad2d(params[f"b{i}"], 1, F_PAD).astype(jnp.float32)
        packed += [w, b]
    return tuple(packed)


@functools.partial(jax.jit, static_argnames=("tile_m",))
def mlp_forward(x_nchw, params, *, tile_m=128):
    """x_nchw: (B, 1, 28, 28) f32.  Returns (B, 2) f32 logits."""
    B = x_nchw.shape[0]
    x_flat = x_nchw.reshape(B, -1).astype(jnp.bfloat16)

    # Pad batch up to a multiple of the tile; padded rows are dropped below.
    b_pad = pl.cdiv(B, tile_m) * tile_m
    if b_pad != B:
        x_flat = jnp.pad(x_flat, ((0, b_pad - B), (0, 0)))

    packed = pack_params(params)

    # Weights/biases: constant block index -> resident in VMEM across the grid.
    param_specs = []
    for p in packed:
        param_specs.append(pl.BlockSpec(p.shape, lambda i: (0, 0)))

    flops = 2 * B * sum(m * n for m, n in LAYER_DIMS)
    bytes_accessed = (x_flat.size * x_flat.dtype.itemsize
                      + sum(int(p.size) * p.dtype.itemsize for p in packed)
                      + b_pad * F_PAD * 4)
    cost = pl.CostEstimate(flops=flops, transcendentals=0,
                           bytes_accessed=bytes_accessed)

    out_full = pl.pallas_call(
        mlp_kernel,
        out_shape=jax.ShapeDtypeStruct((b_pad, F_PAD), jnp.float32),
        grid=(b_pad // tile_m,),
        in_specs=[pl.BlockSpec((tile_m, IN_FEATURES), lambda i: (i, 0))]
                 + param_specs,
        out_specs=pl.BlockSpec((tile_m, F_PAD), lambda i: (i, 0)),
        compiler_params=pltpu.CompilerParams(
            dimension_semantics=("parallel",),
            vmem_limit_bytes=32 * 1024 * 1024,
        ),
        cost_estimate=cost,
    )(x_flat, *packed)

    return out_full[:B, :OUT_FEATURES]


def init_params(key):
    """Deterministic init matching torch nn.Linear shapes.

    Torch stores weight as (out, in); we store the transpose (in, out) so the
    kernel computes x @ W.  Same U(-1/sqrt(in), 1/sqrt(in)) range as torch.
    """
    params = {}
    for i, (fan_in, fan_out) in enumerate(LAYER_DIMS, start=1):
        key, kw, kb = jax.random.split(key, 3)
        bound = 1.0 / (fan_in ** 0.5)
        params[f"w{i}"] = jax.random.uniform(
            kw, (fan_in, fan_out), jnp.float32, minval=-bound, maxval=bound)
        params[f"b{i}"] = jax.random.uniform(
            kb, (1, fan_out), jnp.float32, minval=-bound, maxval=bound)
    return params


def mlp_reference(x_nchw, params):
    """Pure-JAX f32 reference of the torch forward pass."""
    x = x_nchw.reshape(x_nchw.shape[0], -1)
    x = jnp.maximum(x @ params["w1"] + params["b1"], 0.0)
    x = jnp.maximum(x @ params["w2"] + params["b2"], 0.0)
    x = jnp.maximum(x @ params["w3"] + params["b3"], 0.0)
    x = x @ params["w4"] + params["b4"]
    return x


if __name__ == "__main__":
    key = jax.random.PRNGKey(0)
    key, kx1, kx2 = jax.random.split(key, 3)
    params = init_params(key)

    # Small batch, NCHW like the torch module.
    B = 8
    x = jax.random.normal(kx1, (B, 1, 28, 28), jnp.float32)
    out = jax.block_until_ready(mlp_forward(x, params))
    ref = mlp_reference(x, params)
    assert out.shape == (B, 2), out.shape
    assert jnp.allclose(out, ref, atol=3e-2, rtol=3e-2), "mismatch vs reference (B=8)"

    # Exercise multi-tile grid + non-divisible batch padding path.
    B2 = 130
    x2 = jax.random.normal(kx2, (B2, 1, 28, 28), jnp.float32)
    out2 = jax.block_until_ready(mlp_forward(x2, params))
    ref2 = mlp_reference(x2, params)
    assert out2.shape == (B2, 2), out2.shape
    assert jnp.allclose(out2, ref2, atol=3e-2, rtol=3e-2), "mismatch vs reference (B=130)"

    print("KERNEL_OK")
</pallas_src>

<mosaic_0001>
module attributes {stable_mosaic.version = 11 : i64} {
  func.func @mlp_kernel(%arg0: i32, %arg1: memref<128x784xbf16, #tpu.memory_space<vmem>>, %arg2: memref<784x128xbf16, #tpu.memory_space<vmem>>, %arg3: memref<1x128xf32, #tpu.memory_space<vmem>>, %arg4: memref<128x128xbf16, #tpu.memory_space<vmem>>, %arg5: memref<1x128xf32, #tpu.memory_space<vmem>>, %arg6: memref<128x128xbf16, #tpu.memory_space<vmem>>, %arg7: memref<1x128xf32, #tpu.memory_space<vmem>>, %arg8: memref<128x128xbf16, #tpu.memory_space<vmem>>, %arg9: memref<1x128xf32, #tpu.memory_space<vmem>>, %arg10: memref<128x128xf32, #tpu.memory_space<vmem>>) attributes {dimension_semantics = [#tpu.dimension_semantics<parallel>], iteration_bounds = array<i64: 1>, scalar_prefetch = 0 : i64, scratch_operands = 0 : i64, tpu.core_type = #tpu.core_type<tc>, window_params = [{transform_indices = @transform_0, window_bounds = array<i64: 128, 784>}, {pipeline_mode = #tpu.pipeline_mode<synchronous>, transform_indices = @transform_1, window_bounds = array<i64: 784, 128>}, {pipeline_mode = #tpu.pipeline_mode<synchronous>, transform_indices = @transform_2, window_bounds = array<i64: 1, 128>}, {pipeline_mode = #tpu.pipeline_mode<synchronous>, transform_indices = @transform_3, window_bounds = array<i64: 128, 128>}, {pipeline_mode = #tpu.pipeline_mode<synchronous>, transform_indices = @transform_4, window_bounds = array<i64: 1, 128>}, {pipeline_mode = #tpu.pipeline_mode<synchronous>, transform_indices = @transform_5, window_bounds = array<i64: 128, 128>}, {pipeline_mode = #tpu.pipeline_mode<synchronous>, transform_indices = @transform_6, window_bounds = array<i64: 1, 128>}, {pipeline_mode = #tpu.pipeline_mode<synchronous>, transform_indices = @transform_7, window_bounds = array<i64: 128, 128>}, {pipeline_mode = #tpu.pipeline_mode<synchronous>, transform_indices = @transform_8, window_bounds = array<i64: 1, 128>}, {transform_indices = @transform_9, window_bounds = array<i64: 128, 128>}]} {
    %c0 = arith.constant 0 : index
    %c0_0 = arith.constant 0 : index
    %0 = vector.load %arg1[%c0, %c0_0] : memref<128x784xbf16, #tpu.memory_space<vmem>>, vector<128x784xbf16>
    %c0_1 = arith.constant 0 : index
    %c0_2 = arith.constant 0 : index
    %1 = vector.load %arg2[%c0_1, %c0_2] : memref<784x128xbf16, #tpu.memory_space<vmem>>, vector<784x128xbf16>
    %cst = arith.constant dense<0.000000e+00> : vector<128x128xf32>
    %2 = tpu.matmul %0, %1, %cst {dimension_numbers = #tpu.dot_dimension_numbers<[1], [0], [0], [1], [0, 0, 1, 1], [], []>} : vector<128x784xbf16>, vector<784x128xbf16>, vector<128x128xf32> -> vector<128x128xf32>
    %c0_3 = arith.constant 0 : index
    %c0_4 = arith.constant 0 : index
    %3 = vector.load %arg3[%c0_3, %c0_4] : memref<1x128xf32, #tpu.memory_space<vmem>>, vector<1x128xf32>
    %4 = vector.broadcast %3 : vector<1x128xf32> to vector<128x128xf32>
    %5 = arith.addf %2, %4 : vector<128x128xf32>
    %cst_5 = arith.constant 0.000000e+00 : f32
    %6 = vector.broadcast %cst_5 : f32 to vector<128x128xf32>
    %7 = arith.maximumf %5, %6 : vector<128x128xf32>
    %8 = arith.truncf %7 : vector<128x128xf32> to vector<128x128xbf16>
    %c0_6 = arith.constant 0 : index
    %c0_7 = arith.constant 0 : index
    %9 = vector.load %arg4[%c0_6, %c0_7] : memref<128x128xbf16, #tpu.memory_space<vmem>>, vector<128x128xbf16>
    %cst_8 = arith.constant dense<0.000000e+00> : vector<128x128xf32>
    %10 = tpu.matmul %8, %9, %cst_8 {dimension_numbers = #tpu.dot_dimension_numbers<[1], [0], [0], [1], [0, 0, 1, 1], [], []>} : vector<128x128xbf16>, vector<128x128xbf16>, vector<128x128xf32> -> vector<128x128xf32>
    %c0_9 = arith.constant 0 : index
    %c0_10 = arith.constant 0 : index
    %11 = vector.load %arg5[%c0_9, %c0_10] : memref<1x128xf32, #tpu.memory_space<vmem>>, vector<1x128xf32>
    %12 = vector.broadcast %11 : vector<1x128xf32> to vector<128x128xf32>
    %13 = arith.addf %10, %12 : vector<128x128xf32>
    %cst_11 = arith.constant 0.000000e+00 : f32
    %14 = vector.broadcast %cst_11 : f32 to vector<128x128xf32>
    %15 = arith.maximumf %13, %14 : vector<128x128xf32>
    %16 = arith.truncf %15 : vector<128x128xf32> to vector<128x128xbf16>
    %c0_12 = arith.constant 0 : index
    %c0_13 = arith.constant 0 : index
    %17 = vector.load %arg6[%c0_12, %c0_13] : memref<128x128xbf16, #tpu.memory_space<vmem>>, vector<128x128xbf16>
    %cst_14 = arith.constant dense<0.000000e+00> : vector<128x128xf32>
    %18 = tpu.matmul %16, %17, %cst_14 {dimension_numbers = #tpu.dot_dimension_numbers<[1], [0], [0], [1], [0, 0, 1, 1], [], []>} : vector<128x128xbf16>, vector<128x128xbf16>, vector<128x128xf32> -> vector<128x128xf32>
    %c0_15 = arith.constant 0 : index
    %c0_16 = arith.constant 0 : index
    %19 = vector.load %arg7[%c0_15, %c0_16] : memref<1x128xf32, #tpu.memory_space<vmem>>, vector<1x128xf32>
    %20 = vector.broadcast %19 : vector<1x128xf32> to vector<128x128xf32>
    %21 = arith.addf %18, %20 : vector<128x128xf32>
    %cst_17 = arith.constant 0.000000e+00 : f32
    %22 = vector.broadcast %cst_17 : f32 to vector<128x128xf32>
    %23 = arith.maximumf %21, %22 : vector<128x128xf32>
    %24 = arith.truncf %23 : vector<128x128xf32> to vector<128x128xbf16>
    %c0_18 = arith.constant 0 : index
    %c0_19 = arith.constant 0 : index
    %25 = vector.load %arg8[%c0_18, %c0_19] : memref<128x128xbf16, #tpu.memory_space<vmem>>, vector<128x128xbf16>
    %cst_20 = arith.constant dense<0.000000e+00> : vector<128x128xf32>
    %26 = tpu.matmul %24, %25, %cst_20 {dimension_numbers = #tpu.dot_dimension_numbers<[1], [0], [0], [1], [0, 0, 1, 1], [], []>} : vector<128x128xbf16>, vector<128x128xbf16>, vector<128x128xf32> -> vector<128x128xf32>
    %c0_21 = arith.constant 0 : index
    %c0_22 = arith.constant 0 : index
    %27 = vector.load %arg9[%c0_21, %c0_22] : memref<1x128xf32, #tpu.memory_space<vmem>>, vector<1x128xf32>
    %28 = vector.broadcast %27 : vector<1x128xf32> to vector<128x128xf32>
    %29 = arith.addf %26, %28 : vector<128x128xf32>
    %c0_23 = arith.constant 0 : index
    %c0_24 = arith.constant 0 : index
    %30 = vector.load %arg10[%c0_23, %c0_24] : memref<128x128xf32, #tpu.memory_space<vmem>>, vector<128x128xf32>
    tpu.vector_store %arg10[%c0_23, %c0_24], %29 {strides = array<i32>} : memref<128x128xf32, #tpu.memory_space<vmem>>, vector<128x128xf32>,
    return
  }
  func.func @transform_0(%arg0: i32) -> (i32, i32) {
    %c0_i32 = arith.constant 0 : i32
    %c0_i32_0 = arith.constant 0 : i32
    return %arg0, %c0_i32 : i32, i32
  }
  func.func @transform_1(%arg0: i32) -> (i32, i32) {
    %c0_i32 = arith.constant 0 : i32
    %c0_i32_0 = arith.constant 0 : i32
    %c0_i32_1 = arith.constant 0 : i32
    return %c0_i32, %c0_i32_0 : i32, i32
  }
  func.func @transform_2(%arg0: i32) -> (i32, i32) {
    %c0_i32 = arith.constant 0 : i32
    %c0_i32_0 = arith.constant 0 : i32
    %c0_i32_1 = arith.constant 0 : i32
    return %c0_i32, %c0_i32_0 : i32, i32
  }
  func.func @transform_3(%arg0: i32) -> (i32, i32) {
    %c0_i32 = arith.constant 0 : i32
    %c0_i32_0 = arith.constant 0 : i32
    %c0_i32_1 = arith.constant 0 : i32
    return %c0_i32, %c0_i32_0 : i32, i32
  }
  func.func @transform_4(%arg0: i32) -> (i32, i32) {
    %c0_i32 = arith.constant 0 : i32
    %c0_i32_0 = arith.constant 0 : i32
    %c0_i32_1 = arith.constant 0 : i32
    return %c0_i32, %c0_i32_0 : i32, i32
  }
  func.func @transform_5(%arg0: i32) -> (i32, i32) {
    %c0_i32 = arith.constant 0 : i32
    %c0_i32_0 = arith.constant 0 : i32
    %c0_i32_1 = arith.constant 0 : i32
    return %c0_i32, %c0_i32_0 : i32, i32
  }
  func.func @transform_6(%arg0: i32) -> (i32, i32) {
    %c0_i32 = arith.constant 0 : i32
    %c0_i32_0 = arith.constant 0 : i32
    %c0_i32_1 = arith.constant 0 : i32
    return %c0_i32, %c0_i32_0 : i32, i32
  }
  func.func @transform_7(%arg0: i32) -> (i32, i32) {
    %c0_i32 = arith.constant 0 : i32
    %c0_i32_0 = arith.constant 0 : i32
    %c0_i32_1 = arith.constant 0 : i32
    return %c0_i32, %c0_i32_0 : i32, i32
  }
  func.func @transform_8(%arg0: i32) -> (i32, i32) {
    %c0_i32 = arith.constant 0 : i32
    %c0_i32_0 = arith.constant 0 : i32
    %c0_i32_1 = arith.constant 0 : i32
    return %c0_i32, %c0_i32_0 : i32, i32
  }
  func.func @transform_9(%arg0: i32) -> (i32, i32) {
    %c0_i32 = arith.constant 0 : i32
    %c0_i32_0 = arith.constant 0 : i32
    return %arg0, %c0_i32 : i32, i32
  }
}

</mosaic_0001>

<bundles_post_ra>
// kernel: mlp_forward.1
= control target key start
LH: loop header
LB: loop body
LE: loop exit
PB: predicated region body
PF: predicated region fallthrough
CT: control target
= control target key end

     0   :  { %vm776_vm0 = vcmask 130048   ;;  %s3016_s1 = inlined_call_operand.vmem [shape: bf16[784,128], index: 1, kind: input, shape index: {}]   ;;  %s3017_s0 = inlined_call_operand.vmem [shape: bf16[128,784], index: 0, kind: input, shape index: {}]   ;;  %s3018_s3 = inlined_call_operand.vmem [shape: bf16[128,128], index: 3, kind: input, shape index: {}]   ;;  %s3019_s2 = inlined_call_operand.vmem [shape: f32[1,128], index: 2, kind: input, shape index: {}]   ;;  %s3020_s5 = inlined_call_operand.vmem [shape: bf16[128,128], index: 5, kind: input, shape index: {}]   ;;  %s3021_s7 = inlined_call_operand.vmem [shape: bf16[128,128], index: 7, kind: input, shape index: {}]   ;;  %s3022_s4 = inlined_call_operand.vmem [shape: f32[1,128], index: 4, kind: input, shape index: {}]   ;;  %s3023_s6 = inlined_call_operand.vmem [shape: f32[1,128], index: 6, kind: input, shape index: {}]   ;;  %s3024_s8 = inlined_call_operand.vmem [shape: f32[1,128], index: 8, kind: input, shape index: {}]   ;;  %s3025_s9 = inlined_call_operand.vmem [shape: f32[128,128], index: 9, kind: output, shape index: {}]  }
   0x1   :  { %v2289_v0 = vld [vmem:[%s3016_s1 + $0x40] sm:$0xff]   ;;  %v2293_v4 = vld [vmem:[%s3016_s1 + $0x48] sm:$0xff]   ;;  %v2297_v8 = vld [vmem:[%s3016_s1 + $0x50] sm:$0xff]  }
   0x2   :  { %v2290_v1 = vld [vmem:[%s3016_s1] sm:$0xff]   ;;  %1926 = vmatprep.subr.bf16.mxu0 %v2289_v0  ;;  %v2294_v5 = vld [vmem:[%s3016_s1 + $0x8] sm:$0xff]   ;;  %v2298_v9 = vld [vmem:[%s3016_s1 + $0x10] sm:$0xff]  }
   0x3   :  { %v2291_v2 = vld [vmem:[%s3016_s1 + $0xc0] sm:$0xff]   ;;  %1927 = vmatpush3.bf16.msra.mxu0 %v2290_v1  ;;  %v2295_v6 = vld [vmem:[%s3016_s1 + $0xc8] sm:$0xff]   ;;  %v2299_v10 = vld [vmem:[%s3016_s1 + $0xd0] sm:$0xff]  }
   0x4   :  { %v2292_v3 = vld [vmem:[%s3016_s1 + $0x80] sm:$0xff]   ;;  %1990 = vmatprep.subr.bf16.mxu1 %v2291_v2  ;;  %1928 = vmatprep.subr.bf16.mxu0 %v2293_v4  ;;  %v2296_v7 = vld [vmem:[%s3016_s1 + $0x88] sm:$0xff]   ;;  %v2300_v11 = vld [vmem:[%s3016_s1 + $0x90] sm:$0xff]  }
   0x5   :  { %1991 = vmatpush3.bf16.msra.mxu1 %v2292_v3  ;;  %v2301_v12 = vld [vmem:[%s3016_s1 + $0x58] sm:$0xff]   ;;  %v2305_v16 = vld [vmem:[%s3016_s1 + $0x60] sm:$0xff]   ;;  %v2309_v20 = vld [vmem:[%s3016_s1 + $0x68] sm:$0xff]  }
   0x6   :  { %1992 = vmatprep.subr.bf16.mxu1 %v2295_v6  ;;  %v2302_v13 = vld [vmem:[%s3016_s1 + $0x18] sm:$0xff]   ;;  %v2306_v17 = vld [vmem:[%s3016_s1 + $0x20] sm:$0xff]   ;;  %v2310_v21 = vld [vmem:[%s3016_s1 + $0x28] sm:$0xff]  }
   0x7   :  { %1929 = vmatpush3.bf16.msra.mxu0 %v2294_v5  ;;  %v2303_v14 = vld [vmem:[%s3016_s1 + $0xd8] sm:$0xff]   ;;  %v2307_v18 = vld [vmem:[%s3016_s1 + $0xe0] sm:$0xff]   ;;  %v2311_v22 = vld [vmem:[%s3016_s1 + $0xe8] sm:$0xff]  }
   0x8   :  { %1930 = vmatprep.subr.bf16.mxu0 %v2297_v8  ;;  %v2304_v15 = vld [vmem:[%s3016_s1 + $0x98] sm:$0xff]   ;;  %v2308_v19 = vld [vmem:[%s3016_s1 + $0xa0] sm:$0xff]   ;;  %v2312_v23 = vld [vmem:[%s3016_s1 + $0xa8] sm:$0xff]  }
   0x9   :  { %1993 = vmatpush3.bf16.msra.mxu1 %v2296_v7  ;;  %v2313_v24 = vld [vmem:[%s3016_s1 + $0x70] sm:$0xff]   ;;  %v2317_v28 = vld [vmem:[%s3016_s1 + $0x78] sm:$0xff]   ;;  %v2322_v32 = vld [vmem:[%s3017_s0 + $0x4] ss:$28 sps:$4 sm:$0xff]  }
   0xa   :  { %1994 = vmatprep.subr.bf16.mxu1 %v2299_v10  ;;  %v2314_v25 = vld [vmem:[%s3016_s1 + $0x30] sm:$0xff]   ;;  %v2318_v29 = vld [vmem:[%s3016_s1 + $0x38] sm:$0xff]   ;;  %833 = vmatprep.mubr.bf16.mxu0 %v2322_v32  ;;  %v2324_v34 = vld [vmem:[%s3016_s1 + $0x140] sm:$0xff]  }
   0xb   :  { %1931 = vmatpush3.bf16.msra.mxu0 %v2298_v9  ;;  %v2315_v26 = vld [vmem:[%s3016_s1 + $0xf0] sm:$0xff]   ;;  %v2319_v30 = vld [vmem:[%s3016_s1 + $0xf8] sm:$0xff]   ;;  %v2325_v35 = vld [vmem:[%s3017_s0 + $0x8] ss:$28 sps:$4 sm:$0xff]  }
   0xc   :  { %1932 = vmatprep.subr.bf16.mxu0 %v2301_v12  ;;  %v2316_v27 = vld [vmem:[%s3016_s1 + $0xb0] sm:$0xff]   ;;  %v2320_v31 = vld [vmem:[%s3017_s0] ss:$28 sps:$4 sm:$0xff]   ;;  %v2327_v36 = vld [vmem:[%s3017_s0 + $0xc] ss:$28 sps:$4 sm:$0xff]  }
   0xd   :  { %1995 = vmatpush3.bf16.msra.mxu1 %v2300_v11  ;;  %v2323_v33 = vld [vmem:[%s3016_s1 + $0xb8] sm:$0xff]   ;;  %v2328_v37 = vld [vmem:[%s3016_s1 + $0x100] sm:$0xff]   ;;  %930 = vmatprep.mubr.bf16.mxu1 %v2327_v36  ;;  %v2332_v40 = vld [vmem:[%s3016_s1 + $0x148] sm:$0xff]  }
   0xe   :  { %1996 = vmatprep.subr.bf16.mxu1 %v2303_v14  ;;  %v2329_v38 = vld [vmem:[%s3017_s0 + $0x3c] ss:$28 sps:$4 sm:$0xff]   ;;  %v2333_v41 = vld [vmem:[%s3017_s0 + $0x44] ss:$28 sps:$4 sm:$0xff]   ;;  %v2335_v42 = vld [vmem:[%s3016_s1 + $0x108] sm:$0xff]  }
   0xf   :  { %1933 = vmatpush3.bf16.msra.mxu0 %v2302_v13  ;;  %v2331_v39 = vld [vmem:[%s3017_s0 + $0x38] ss:$28 sps:$4 sm:$0xff]   ;;  %v2336_v43 = vld [vmem:[%s3017_s0 + $0x40] ss:$28 sps:$4 sm:$0xff]   ;;  %v2339_v48 = vld [vmem:[%s3017_s0 + $0x70] ss:$28 sps:$4 sm:$0xff]  }
  0x10   :  { %1934 = vmatprep.subr.bf16.mxu0 %v2305_v16  ;;  %v2337_v44 = vld [vmem:[%s3017_s0 + $0x74] ss:$28 sps:$4 sm:$0xff]   ;;  %v2341_v46 = vld [vmem:[%s3017_s0 + $0x7c] ss:$28 sps:$4 sm:$0xff]   ;;  %v2345_v49 = vld [vmem:[%s3017_s0 + $0xac] ss:$28 sps:$4 sm:$0xff]  }
  0x11   :  { %1997 = vmatpush3.bf16.msra.mxu1 %v2304_v15  ;;  %v2340_v45 = vld [vmem:[%s3016_s1 + $0x150] sm:$0xff]   ;;  %v2348_v50 = vld [vmem:[%s3016_s1 + $0x158] sm:$0xff]   ;;  %v2356_v54 = vld [vmem:[%s3016_s1 + $0x160] sm:$0xff]  }
  0x12   :  { %1998 = vmatprep.subr.bf16.mxu1 %v2307_v18  ;;  %v2343_v47 = vld [vmem:[%s3016_s1 + $0x110] sm:$0xff]   ;;  %v2351_v52 = vld [vmem:[%s3016_s1 + $0x118] sm:$0xff]   ;;  %v2347_v55 = vld [vmem:[%s3017_s0 + $0xa8] ss:$28 sps:$4 sm:$0xff]  }
  0x13   :  { %1935 = vmatpush3.bf16.msra.mxu0 %v2306_v17  ;;  %v2344_v51 = vld [vmem:[%s3017_s0 + $0x78] ss:$28 sps:$4 sm:$0xff]   ;;  %v2359_v56 = vld [vmem:[%s3016_s1 + $0x120] sm:$0xff]   ;;  %v2352_v59 = vld [vmem:[%s3017_s0 + $0xb0] ss:$28 sps:$4 sm:$0xff]  }
  0x14   :  { %1936 = vmatprep.subr.bf16.mxu0 %v2309_v20  ;;  %v2349_v53 = vld [vmem:[%s3017_s0 + $0xb4] ss:$28 sps:$4 sm:$0xff]   ;;  %v2353_v57 = vld [vmem:[%s3017_s0 + $0xe4] ss:$28 sps:$4 sm:$0xff]   ;;  %v2365_v60 = vld [vmem:[%s3016_s1 + $0x168] sm:$0xff]  }
  0x15   :  { %1999 = vmatpush3.bf16.msra.mxu1 %v2308_v19  ;;  %v2361_v58 = vld [vmem:[%s3016_s1 + $0x180] sm:$0xff]   ;;  %v2357_v61 = vld [vmem:[%s3017_s0 + $0xec] ss:$28 sps:$4 sm:$0xff]   ;;  %v2373_v0 = vld [vmem:[%s3016_s1 + $0x170] sm:$0xff]  }
  0x16   :  { %2000 = vmatprep.subr.bf16.mxu1 %v2311_v22  ;;  %v2368_v62 = vld [vmem:[%s3016_s1 + $0x128] sm:$0xff]   ;;  %v2355_v63 = vld [vmem:[%s3017_s0 + $0xe0] ss:$28 sps:$4 sm:$0xff]   ;;  %v2376_v2 = vld [vmem:[%s3016_s1 + $0x130] sm:$0xff]  }
  0x17   :  { %1937 = vmatpush3.bf16.msra.mxu0 %v2310_v21  ;;  %v2362_v1 = vld [vmem:[%s3017_s0 + $0x11c] ss:$28 sps:$4 sm:$0xff]   ;;  %v2360_v3 = vld [vmem:[%s3017_s0 + $0xe8] ss:$28 sps:$4 sm:$0xff]   ;;  %v2370_v8 = vld [vmem:[%s3017_s0 + $0x154] ss:$28 sps:$4 sm:$0xff]  }
  0x18   :  { %1938 = vmatprep.subr.bf16.mxu0 %v2313_v24  ;;  %v2366_v4 = vld [vmem:[%s3017_s0 + $0x124] ss:$28 sps:$4 sm:$0xff]   ;;  %v2381_v5 = vld [vmem:[%s3016_s1 + $0x178] sm:$0xff]   ;;  %v2372_v11 = vld [vmem:[%s3017_s0 + $0x150] ss:$28 sps:$4 sm:$0xff]  }
  0x19   :  { %2001 = vmatpush3.bf16.msra.mxu1 %v2312_v23  ;;  %v2384_v6 = vld [vmem:[%s3016_s1 + $0x138] sm:$0xff]   ;;  %v2378_v12 = vld [vmem:[%s3017_s0 + $0x18c] ss:$28 sps:$4 sm:$0xff]   ;;  %v2382_v14 = vld [vmem:[%s3017_s0 + $0x194] ss:$28 sps:$4 sm:$0xff]  }
  0x1a   :  { %2002 = vmatprep.subr.bf16.mxu1 %v2315_v26  ;;  %v2364_v7 = vld [vmem:[%s3017_s0 + $0x118] ss:$28 sps:$4 sm:$0xff]   ;;  %v2369_v9 = vld [vmem:[%s3017_s0 + $0x120] ss:$28 sps:$4 sm:$0xff]   ;;  %v2380_v15 = vld [vmem:[%s3017_s0 + $0x188] ss:$28 sps:$4 sm:$0xff]  }
  0x1b   :  { %1939 = vmatpush3.bf16.msra.mxu0 %v2314_v25  ;;  %v2374_v10 = vld [vmem:[%s3017_s0 + $0x15c] ss:$28 sps:$4 sm:$0xff]   ;;  %v2388_v16 = vld [vmem:[%s3017_s0 + $0x14] ss:$28 sps:$4 sm:$0xff]   ;;  %v2391_v20 = vld [vmem:[%s3017_s0 + $0x4c] ss:$28 sps:$4 sm:$0xff]  }
  0x1c   :  { %1940 = vmatprep.subr.bf16.mxu0 %v2317_v28  ;;  %v2377_v13 = vld [vmem:[%s3017_s0 + $0x158] ss:$28 sps:$4 sm:$0xff]   ;;  %v2385_v17 = vld [vmem:[%s3017_s0 + $0x190] ss:$28 sps:$4 sm:$0xff]   ;;  %v2397_v22 = vld [vmem:[%s3017_s0 + $0x88] ss:$28 sps:$4 sm:$0xff]  }
  0x1d   :  { %2003 = vmatpush3.bf16.msra.mxu1 %v2316_v27  ;;  %v2389_v18 = vld [vmem:[%s3017_s0 + $0x18] ss:$28 sps:$4 sm:$0xff]   ;;  %v2386_v19 = vld [vmem:[%s3017_s0 + $0x10] ss:$28 sps:$4 sm:$0xff]   ;;  %v2393_v23 = vld [vmem:[%s3017_s0 + $0x48] ss:$28 sps:$4 sm:$0xff]  }
  0x1e   :  { %2004 = vmatprep.subr.bf16.mxu1 %v2319_v30  ;;  %v2390_v21 = vld [vmem:[%s3017_s0 + $0x50] ss:$28 sps:$4 sm:$0xff]   ;;  %v2394_v24 = vld [vmem:[%s3017_s0 + $0x84] ss:$28 sps:$4 sm:$0xff]   ;;  %v2405_v26 = vld [vmem:[%s3017_s0 + $0xf8] ss:$28 sps:$4 sm:$0xff]  }
  0x1f   :  { %1941 = vmatpush3.bf16.msra.mxu0 %v2318_v29  ;;  %v2398_v25 = vld [vmem:[%s3017_s0 + $0xc0] ss:$28 sps:$4 sm:$0xff]   ;;  %v2406_v29 = vld [vmem:[%s3017_s0 + $0x130] ss:$28 sps:$4 sm:$0xff]   ;;  %v2413_v30 = vld [vmem:[%s3017_s0 + $0x168] ss:$28 sps:$4 sm:$0xff]  }
  0x20   :  { %2054 = vmatprep.subr.bf16.mxu0 %v2324_v34  ;;  %v2396_v27 = vld [vmem:[%s3017_s0 + $0x80] ss:$28 sps:$4 sm:$0xff]   ;;  %v2402_v32 = vld [vmem:[%s3017_s0 + $0xf4] ss:$28 sps:$4 sm:$0xff]   ;;  %v2409_v36 = vld [vmem:[%s3017_s0 + $0x128] ss:$28 sps:$4 sm:$0xff]  }
  0x21   :  { %2005 = vmatpush3.bf16.msra.mxu1 %v2323_v33  ;;  %v2399_v28 = vld [vmem:[%s3017_s0 + $0xbc] ss:$28 sps:$4 sm:$0xff]   ;;  %v2404_v34 = vld [vmem:[%s3017_s0 + $0xf0] ss:$28 sps:$4 sm:$0xff]  }
  0x22   :  { %834 = vmatmul.mubr.bf16.vlgmr.msra.gmra.mrb[0].mxu0 %v2320_v31  ;;  %2175 = vmatprep.subr.bf16.mxu1 %v2361_v58  ;;  %v2401_v31 = vld [vmem:[%s3017_s0 + $0xb8] ss:$28 sps:$4 sm:$0xff]   ;;  %v2414_v33 = vld [vmem:[%s3017_s0 + $0x1a0] ss:$28 sps:$4 sm:$0xff]  }
  0x23   :  { %2055 = vmatpush3.bf16.msra.mxu0 %v2328_v37  ;;  %841 = vmatprep.mubr.bf16.mxu0 %v2329_v38  ;;  %v2410_v37 = vld [vmem:[%s3017_s0 + $0x164] ss:$28 sps:$4 sm:$0xff]  }
  0x24   :  { %931 = vmatmul.mubr.bf16.vlgmr.msra.gmra.mrb[0].mxu1 %v2325_v35  ;;  %2056 = vmatprep.subr.bf16.mxu0 %v2332_v40  ;;  %v2407_v35 = vld [vmem:[%s3017_s0 + $0x12c] ss:$28 sps:$4 sm:$0xff]   ;;  %v2412_v38 = vld [vmem:[%s3017_s0 + $0x160] ss:$28 sps:$4 sm:$0xff]   ;;  %v2417_v40 = vld [vmem:[%s3017_s0 + $0x198] ss:$28 sps:$4 sm:$0xff]  }
  0x25   :  { %938 = vmatprep.mubr.bf16.mxu1 %v2333_v41  ;;  %2176 = vmatpush3.bf16.msra.mxu1 %v2361_v58  ;;  %v2418_v41 = vld [vmem:[%s3018_s3] sm:$0xff]  }
  0x26   :  { %2193 = vmatprep.subr.bf16.mxu1 %v2418_v41 }
  0x27   :  { %2057 = vmatpush3.bf16.msra.mxu0 %v2335_v42  ;;  %v2419_v42 = vld [vmem:[%s3018_s3 + $0x8] sm:$0xff]  }
  0x28   :  { %2058 = vmatprep.subr.bf16.mxu0 %v2340_v45  ;;  %v2422_v45 = vld [vmem:[%s3018_s3 + $0x20] sm:$0xff]  }
  0x2a   :  { %842 = vmatmul.mubr.bf16.gmra.mrb[4].mxu0 %v2331_v39  ;;  %v2415_v39 = vld [vmem:[%s3017_s0 + $0x19c] ss:$28 sps:$4 sm:$0xff]  }
  0x2b   :  { %849 = vmatprep.mubr.bf16.mxu0 %v2337_v44  ;;  %2059 = vmatpush3.bf16.msra.mxu0 %v2343_v47  ;;  %v2421_v44 = vld [vmem:[%s3018_s3 + $0x18] sm:$0xff]   ;;  %v2424_v47 = vld [vmem:[%s3018_s3 + $0x30] sm:$0xff]  }
  0x2c   :  { %939 = vmatmul.mubr.bf16.gmra.mrb[4].mxu1 %v2336_v43  ;;  %2060 = vmatprep.subr.bf16.mxu0 %v2348_v50  ;;  %v2420_v43 = vld [vmem:[%s3018_s3 + $0x10] sm:$0xff]   ;;  %v2842_v50 = vld [vmem:[%s3019_s2] ss:$0 sm:$0xff] }
  0x2d   :  { %946 = vmatprep.mubr.bf16.mxu1 %v2341_v46  ;;  %v2423_v46 = vld [vmem:[%s3018_s3 + $0x28] sm:$0xff]  }
  0x2f   :  { %2061 = vmatpush3.bf16.msra.mxu0 %v2351_v52 }
  0x30   :  { %2062 = vmatprep.subr.bf16.mxu0 %v2356_v54 }
  0x32   :  { %850 = vmatmul.mubr.bf16.gmra.mrb[8].mxu0 %v2339_v48  ;;  %v2425_v48 = vld [vmem:[%s3018_s3 + $0x38] sm:$0xff]  }
  0x33   :  { %857 = vmatprep.mubr.bf16.mxu0 %v2345_v49  ;;  %2063 = vmatpush3.bf16.msra.mxu0 %v2359_v56 }
  0x34   :  { %947 = vmatmul.mubr.bf16.gmra.mrb[8].mxu1 %v2344_v51  ;;  %2064 = vmatprep.subr.bf16.mxu0 %v2365_v60 }
  0x35   :  { %954 = vmatprep.mubr.bf16.mxu1 %v2349_v53 }
  0x37   :  { %2065 = vmatpush3.bf16.msra.mxu0 %v2368_v62 }
  0x38   :  { %2066 = vmatprep.subr.bf16.mxu0 %v2373_v0 }
  0x3a   :  { %858 = vmatmul.mubr.bf16.gmra.mrb[12].mxu0 %v2347_v55 }
  0x3b   :  { %865 = vmatprep.mubr.bf16.mxu0 %v2353_v57  ;;  %2067 = vmatpush3.bf16.msra.mxu0 %v2376_v2 }
  0x3c   :  { %955 = vmatmul.mubr.bf16.gmra.mrb[12].mxu1 %v2352_v59  ;;  %2068 = vmatprep.subr.bf16.mxu0 %v2381_v5 }
  0x3d   :  { %962 = vmatprep.mubr.bf16.mxu1 %v2357_v61 }
  0x3f   :  { %2069 = vmatpush3.bf16.msra.mxu0 %v2384_v6 }
  0x42   :  { %866 = vmatmul.mubr.bf16.gmra.mrb[16].mxu0 %v2355_v63 }
  0x43   :  { %873 = vmatprep.mubr.bf16.mxu0 %v2362_v1  ;;  %v2426_v1 = vld [vmem:[%s3020_s5] sm:$0xff]  }
  0x44   :  { %963 = vmatmul.mubr.bf16.gmra.mrb[16].mxu1 %v2360_v3  ;;  %v2427_v3 = vld [vmem:[%s3020_s5 + $0x8] sm:$0xff]   ;;  %2225 = vmatprep.subr.bf16.mxu0 %v2426_v1 }
  0x45   :  { %970 = vmatprep.mubr.bf16.mxu1 %v2366_v4 }
  0x4a   :  { %874 = vmatmul.mubr.bf16.gmra.mrb[20].mxu0 %v2364_v7 }
  0x4b   :  { %881 = vmatprep.mubr.bf16.mxu0 %v2370_v8  ;;  %v2428_v8 = vld [vmem:[%s3020_s5 + $0x10] sm:$0xff]  }
  0x4c   :  { %971 = vmatmul.mubr.bf16.gmra.mrb[20].mxu1 %v2369_v9 }
  0x4d   :  { %978 = vmatprep.mubr.bf16.mxu1 %v2374_v10 }
  0x52   :  { %882 = vmatmul.mubr.bf16.gmra.mrb[24].mxu0 %v2372_v11 }
  0x53   :  { %889 = vmatprep.mubr.bf16.mxu0 %v2378_v12 }
  0x54   :  { %979 = vmatmul.mubr.bf16.gmra.mrb[24].mxu1 %v2377_v13 }
  0x55   :  { %986 = vmatprep.mubr.bf16.mxu1 %v2382_v14 }
  0x5a   :  { %890 = vmatmul.mubr.bf16.gmra.mrb[28].mxu0 %v2380_v15 }
  0x5b   :  { %1027 = vmatprep.mubr.bf16.mxu0 %v2388_v16 }
  0x5c   :  { %987 = vmatmul.mubr.bf16.gmra.mrb[28].mxu1 %v2385_v17 }
  0x5d   :  { %2177 = vmatprep.mubr.msk.bf16.mxu1 %vm776_vm0, %v2389_v18 }
  0x62   :  { %1028 = vmatmul.mubr.bf16.vlgmr.msra.gmra.mrb[32].mxu0 %v2386_v19 }
  0x63   :  { %1035 = vmatprep.mubr.bf16.mxu0 %v2391_v20  ;;  %2226 = vmatpush3.bf16.msra.mxu0 %v2426_v1  ;;  %v2429_v20 = vld [vmem:[%s3020_s5 + $0x18] sm:$0xff]  }
  0x64   :  { %2178 = vmatmul.mubr.msk.bf16.vlgmr.msra.gmra.mrb[32].mxu1 %vm776_vm0, %v2390_v21  ;;  %2227 = vmatprep.subr.bf16.mxu0 %v2427_v3 }
  0x65   :  { %2181 = vmatprep.mubr.msk.bf16.mxu1 %vm776_vm0, %v2397_v22  ;;  %2194 = vmatpush3.bf16.msra.mxu1 %v2418_v41 }
  0x66   :  { %2195 = vmatprep.subr.bf16.mxu1 %v2419_v42 }
  0x67   :  { %2228 = vmatpush3.bf16.msra.mxu0 %v2427_v3 }
  0x68   :  { %2229 = vmatprep.subr.bf16.mxu0 %v2428_v8 }
  0x69   :  { %2196 = vmatpush3.bf16.msra.mxu1 %v2419_v42 }
  0x6a   :  { %1036 = vmatmul.mubr.bf16.gmra.mrb[36].mxu0 %v2393_v23  ;;  %2197 = vmatprep.subr.bf16.mxu1 %v2420_v43 }
  0x6b   :  { %1043 = vmatprep.mubr.bf16.mxu0 %v2394_v24  ;;  %2230 = vmatpush3.bf16.msra.mxu0 %v2428_v8 }
  0x6c   :  { %2182 = vmatmul.mubr.msk.bf16.gmra.mrb[36].mxu1 %vm776_vm0, %v2398_v25  ;;  %2231 = vmatprep.subr.bf16.mxu0 %v2429_v20 }
  0x6d   :  { %2185 = vmatprep.mubr.msk.bf16.mxu1 %vm776_vm0, %v2405_v26  ;;  %2198 = vmatpush3.bf16.msra.mxu1 %v2420_v43 }
  0x6e   :  { %2199 = vmatprep.subr.bf16.mxu1 %v2421_v44 }
  0x6f   :  { %2232 = vmatpush3.bf16.msra.mxu0 %v2429_v20 }
  0x71   :  { %2200 = vmatpush3.bf16.msra.mxu1 %v2421_v44 }
  0x72   :  { %1044 = vmatmul.mubr.bf16.gmra.mrb[40].mxu0 %v2396_v27  ;;  %2201 = vmatprep.subr.bf16.mxu1 %v2422_v45 }
  0x73   :  { %1051 = vmatprep.mubr.bf16.mxu0 %v2399_v28  ;;  %v2430_v28 = vld [vmem:[%s3020_s5 + $0x20] sm:$0xff]  }
  0x74   :  { %2186 = vmatmul.mubr.msk.bf16.gmra.mrb[40].mxu1 %vm776_vm0, %v2406_v29  ;;  %2233 = vmatprep.subr.bf16.mxu0 %v2430_v28 }
  0x75   :  { %2189 = vmatprep.mubr.msk.bf16.mxu1 %vm776_vm0, %v2413_v30  ;;  %2202 = vmatpush3.bf16.msra.mxu1 %v2422_v45 }
  0x76   :  { %2203 = vmatprep.subr.bf16.mxu1 %v2423_v46  ;;  %2234 = vmatpush3.bf16.msra.mxu0 %v2430_v28 }
  0x79   :  { %2204 = vmatpush3.bf16.msra.mxu1 %v2423_v46 }
  0x7a   :  { %1052 = vmatmul.mubr.bf16.gmra.mrb[44].mxu0 %v2401_v31  ;;  %2205 = vmatprep.subr.bf16.mxu1 %v2424_v47 }
  0x7b   :  { %1059 = vmatprep.mubr.bf16.mxu0 %v2402_v32 }
  0x7c   :  { %2190 = vmatmul.mubr.msk.bf16.gmra.mrb[44].mxu1 %vm776_vm0, %v2414_v33 }
  0x7d   :  { %2206 = vmatpush3.bf16.msra.mxu1 %v2424_v47 }
  0x7e   :  { %2207 = vmatprep.subr.bf16.mxu1 %v2425_v48 }
  0x81   :  { %2208 = vmatpush3.bf16.msra.mxu1 %v2425_v48 }
  0x82   :  { %1060 = vmatmul.mubr.bf16.gmra.mrb[48].mxu0 %v2404_v34 }
  0x83   :  { %1067 = vmatprep.mubr.bf16.mxu0 %v2407_v35 }
  0x8a   :  { %1068 = vmatmul.mubr.bf16.gmra.mrb[52].mxu0 %v2409_v36 }
  0x8b   :  { %1075 = vmatprep.mubr.bf16.mxu0 %v2410_v37 }
  0x92   :  { %1076 = vmatmul.mubr.bf16.gmra.mrb[56].mxu0 %v2412_v38  ;;  %v2431_v38 = vld [vmem:[%s3020_s5 + $0x28] sm:$0xff]  }
  0x93   :  { %1083 = vmatprep.mubr.bf16.mxu0 %v2415_v39  ;;  %2235 = vmatprep.subr.bf16.mxu0 %v2431_v38 }
  0x94   :  { %2236 = vmatpush3.bf16.msra.mxu0 %v2431_v38 }
  0x9a   :  { %1084 = vmatmul.mubr.bf16.gmra.mrb[60].mxu0 %v2417_v40 }
  0xf5   :  { %v1942_v49 = vpop.f32.mrb[0].mxu0 }
  0xf6   :  { %v1943_v51 = vpop.f32.mrb[1].mxu0 }
  0xf7   :  { %v1944_v52 = vadd.f32 %v1943_v51, %v1942_v49  ;;  %v1945_v53 = vpop.f32.mrb[2].mxu0  ;;  %v2006_v54 = vpop.f32.mrb[0].mxu1 }
  0xf8   :  { %v1946_v55 = vpop.f32.mrb[3].mxu0  ;;  %v2007_v58 = vpop.f32.mrb[1].mxu1 }
  0xf9   :  { %v836_v56 = vadd.f32 %v1944_v52, %v2842_v50  ;;  %v1947_v57 = vadd.f32 %v1946_v55, %v1945_v53  ;;  %v2008_v59 = vadd.f32 %v2007_v58, %v2006_v54  ;;  %v2009_v60 = vpop.f32.mrb[2].mxu1 }
  0xfa   :  { %v2010_v62 = vpop.f32.mrb[3].mxu1 }
  0xfb   :  { %v839_v61 = vadd.f32 %v1947_v57, %v2842_v50  ;;  %v2846_v63 = vadd.f32 %v2008_v59, %v836_v56  ;;  %v2011_v0 = vadd.f32 %v2010_v62, %v2009_v60 }
  0xfd   :  { %v1948_v2 = vpop.f32.mrb[4].mxu0  ;;  %v2854_v4 = vadd.f32 %v2011_v0, %v839_v61 }
  0xfe   :  { %v1949_v5 = vpop.f32.mrb[5].mxu0 }
  0xff   :  { %v1950_v6 = vadd.f32 %v1949_v5, %v1948_v2  ;;  %v1951_v7 = vpop.f32.mrb[6].mxu0  ;;  %v2012_v9 = vpop.f32.mrb[4].mxu1 }
 0x100   :  { %v1952_v10 = vpop.f32.mrb[7].mxu0  ;;  %v2013_v13 = vpop.f32.mrb[5].mxu1 }
 0x101   :  { %v844_v11 = vadd.f32 %v1950_v6, %v2842_v50  ;;  %v1953_v12 = vadd.f32 %v1952_v10, %v1951_v7  ;;  %v2014_v14 = vadd.f32 %v2013_v13, %v2012_v9  ;;  %v2015_v15 = vpop.f32.mrb[6].mxu1 }
 0x102   :  { %v2016_v17 = vpop.f32.mrb[7].mxu1 }
 0x103   :  { %v847_v16 = vadd.f32 %v1953_v12, %v2842_v50  ;;  %v2861_v18 = vadd.f32 %v2014_v14, %v844_v11  ;;  %v2017_v19 = vadd.f32 %v2016_v17, %v2015_v15 }
 0x105   :  { %v1954_v21 = vpop.f32.mrb[8].mxu0  ;;  %v2866_v22 = vadd.f32 %v2017_v19, %v847_v16 }
 0x106   :  { %v1955_v23 = vpop.f32.mrb[9].mxu0 }
 0x107   :  { %v1956_v24 = vadd.f32 %v1955_v23, %v1954_v21  ;;  %v1957_v25 = vpop.f32.mrb[10].mxu0  ;;  %v2018_v26 = vpop.f32.mrb[8].mxu1 }
 0x108   :  { %v1958_v27 = vpop.f32.mrb[11].mxu0  ;;  %v2019_v31 = vpop.f32.mrb[9].mxu1 }
 0x109   :  { %v852_v29 = vadd.f32 %v1956_v24, %v2842_v50  ;;  %v1959_v30 = vadd.f32 %v1958_v27, %v1957_v25  ;;  %v2020_v32 = vadd.f32 %v2019_v31, %v2018_v26  ;;  %v2021_v33 = vpop.f32.mrb[10].mxu1 }
 0x10a   :  { %v2022_v35 = vpop.f32.mrb[11].mxu1 }
 0x10b   :  { %v855_v34 = vadd.f32 %v1959_v30, %v2842_v50  ;;  %v2873_v36 = vadd.f32 %v2020_v32, %v852_v29  ;;  %v2023_v37 = vadd.f32 %v2022_v35, %v2021_v33 }
 0x10d   :  { %v1960_v39 = vpop.f32.mrb[12].mxu0  ;;  %v2878_v40 = vadd.f32 %v2023_v37, %v855_v34 }
 0x10e   :  { %v1961_v41 = vpop.f32.mrb[13].mxu0 }
 0x10f   :  { %v1962_v42 = vadd.f32 %v1961_v41, %v1960_v39  ;;  %v1963_v43 = vpop.f32.mrb[14].mxu0  ;;  %v2024_v44 = vpop.f32.mrb[12].mxu1 }
 0x110   :  { %v1964_v45 = vpop.f32.mrb[15].mxu0  ;;  %v2025_v48 = vpop.f32.mrb[13].mxu1 }
 0x111   :  { %v860_v46 = vadd.f32 %v1962_v42, %v2842_v50  ;;  %v1965_v47 = vadd.f32 %v1964_v45, %v1963_v43  ;;  %v2026_v49 = vadd.f32 %v2025_v48, %v2024_v44  ;;  %v2027_v51 = vpop.f32.mrb[14].mxu1 }
 0x112   :  { %v2028_v53 = vpop.f32.mrb[15].mxu1 }
 0x113   :  { %v863_v52 = vadd.f32 %v1965_v47, %v2842_v50  ;;  %v2882_v54 = vadd.f32 %v2026_v49, %v860_v46  ;;  %v2029_v55 = vadd.f32 %v2028_v53, %v2027_v51 }
 0x115   :  { %v1966_v56 = vpop.f32.mrb[16].mxu0  ;;  %v2884_v57 = vadd.f32 %v2029_v55, %v863_v52 }
 0x116   :  { %v1967_v58 = vpop.f32.mrb[17].mxu0 }
 0x117   :  { %v1968_v59 = vadd.f32 %v1967_v58, %v1966_v56  ;;  %v1969_v60 = vpop.f32.mrb[18].mxu0  ;;  %v2030_v61 = vpop.f32.mrb[16].mxu1 }
 0x118   :  { %v1970_v62 = vpop.f32.mrb[19].mxu0  ;;  %v2031_v2 = vpop.f32.mrb[17].mxu1 }
 0x119   :  { %v868_v0 = vadd.f32 %v1968_v59, %v2842_v50  ;;  %v1971_v1 = vadd.f32 %v1970_v62, %v1969_v60  ;;  %v2032_v3 = vadd.f32 %v2031_v2, %v2030_v61  ;;  %v2033_v5 = vpop.f32.mrb[18].mxu1 }
 0x11a   :  { %v2034_v7 = vpop.f32.mrb[19].mxu1 }
 0x11b   :  { %v871_v6 = vadd.f32 %v1971_v1, %v2842_v50  ;;  %v2888_v8 = vadd.f32 %v2032_v3, %v868_v0  ;;  %v2035_v9 = vadd.f32 %v2034_v7, %v2033_v5 }
 0x11d   :  { %v1972_v10 = vpop.f32.mrb[20].mxu0  ;;  %v2890_v11 = vadd.f32 %v2035_v9, %v871_v6 }
 0x11e   :  { %v1973_v12 = vpop.f32.mrb[21].mxu0 }
 0x11f   :  { %v1974_v13 = vadd.f32 %v1973_v12, %v1972_v10  ;;  %v1975_v14 = vpop.f32.mrb[22].mxu0  ;;  %v2036_v15 = vpop.f32.mrb[20].mxu1 }
 0x120   :  { %v1976_v16 = vpop.f32.mrb[23].mxu0  ;;  %v2037_v20 = vpop.f32.mrb[21].mxu1 }
 0x121   :  { %v876_v17 = vadd.f32 %v1974_v13, %v2842_v50  ;;  %v1977_v19 = vadd.f32 %v1976_v16, %v1975_v14  ;;  %v2038_v21 = vadd.f32 %v2037_v20, %v2036_v15  ;;  %v2039_v23 = vpop.f32.mrb[22].mxu1 }
 0x122   :  { %v2040_v25 = vpop.f32.mrb[23].mxu1 }
 0x123   :  { %v879_v24 = vadd.f32 %v1977_v19, %v2842_v50  ;;  %v2894_v26 = vadd.f32 %v2038_v21, %v876_v17  ;;  %v2041_v27 = vadd.f32 %v2040_v25, %v2039_v23 }
 0x125   :  { %v1978_v28 = vpop.f32.mrb[24].mxu0  ;;  %v2896_v29 = vadd.f32 %v2041_v27, %v879_v24 }
 0x126   :  { %v1979_v30 = vpop.f32.mrb[25].mxu0 }
 0x127   :  { %v1980_v31 = vadd.f32 %v1979_v30, %v1978_v28  ;;  %v1981_v32 = vpop.f32.mrb[26].mxu0  ;;  %v2042_v33 = vpop.f32.mrb[24].mxu1 }
 0x128   :  { %v1982_v34 = vpop.f32.mrb[27].mxu0  ;;  %v2043_v38 = vpop.f32.mrb[25].mxu1 }
 0x129   :  { %v884_v35 = vadd.f32 %v1980_v31, %v2842_v50  ;;  %v1983_v37 = vadd.f32 %v1982_v34, %v1981_v32  ;;  %v2044_v39 = vadd.f32 %v2043_v38, %v2042_v33  ;;  %v2045_v41 = vpop.f32.mrb[26].mxu1 }
 0x12a   :  { %v2046_v43 = vpop.f32.mrb[27].mxu1 }
 0x12b   :  { %v887_v42 = vadd.f32 %v1983_v37, %v2842_v50  ;;  %v2900_v44 = vadd.f32 %v2044_v39, %v884_v35  ;;  %v2047_v45 = vadd.f32 %v2046_v43, %v2045_v41 }
 0x12d   :  { %v1984_v46 = vpop.f32.mrb[28].mxu0  ;;  %v2902_v47 = vadd.f32 %v2047_v45, %v887_v42 }
 0x12e   :  { %v1985_v48 = vpop.f32.mrb[29].mxu0 }
 0x12f   :  { %v1986_v49 = vadd.f32 %v1985_v48, %v1984_v46  ;;  %v1987_v51 = vpop.f32.mrb[30].mxu0  ;;  %v2048_v52 = vpop.f32.mrb[28].mxu1 }
 0x130   :  { %v1988_v53 = vpop.f32.mrb[31].mxu0  ;;  %v2049_v58 = vpop.f32.mrb[29].mxu1 }
 0x131   :  { %v892_v55 = vadd.f32 %v1986_v49, %v2842_v50  ;;  %v1989_v56 = vadd.f32 %v1988_v53, %v1987_v51  ;;  %v2050_v59 = vadd.f32 %v2049_v58, %v2048_v52  ;;  %v2051_v60 = vpop.f32.mrb[30].mxu1 }
 0x132   :  { %v2052_v62 = vpop.f32.mrb[31].mxu1 }
 0x133   :  { %v895_v61 = vadd.f32 %v1989_v56, %v2842_v50  ;;  %v2906_v0 = vadd.f32 %v2050_v59, %v892_v55  ;;  %v2053_v1 = vadd.f32 %v2052_v62, %v2051_v60 }
 0x135   :  { %v2070_v2 = vpop.f32.mrb[32].mxu0  ;;  %v2908_v3 = vadd.f32 %v2053_v1, %v895_v61 }
 0x136   :  { %v2071_v5 = vpop.f32.mrb[33].mxu0 }
 0x137   :  { %v2072_v6 = vadd.f32 %v2071_v5, %v2070_v2  ;;  %v2073_v7 = vpop.f32.mrb[34].mxu0  ;;  %v2179_v10 = vpop.f32.mrb[32].mxu1 }
 0x138   :  { %v2074_v9 = vpop.f32.mrb[35].mxu0  ;;  %v1126_v14 = vpop.f32.mrb[33].mxu1 }
 0x139   :  { %v2075_v12 = vadd.f32 %v2074_v9, %v2073_v7  ;;  %v1030_v13 = vadd.f32 %v2072_v6, %v2846_v63  ;;  %v2180_v15 = vpop.f32.mrb[34].mxu1 }
 0x13a   :  { %v1129_v17 = vpop.f32.mrb[35].mxu1 }
 0x13b   :  { %v1127_v16 = vadd.f32 %v1126_v14, %v1030_v13  ;;  %v1033_v50 = vadd.f32 %v2075_v12, %v2854_v4 }
 0x13d   :  { %v1130_v19 = vadd.f32 %v1129_v17, %v1033_v50  ;;  %v2076_v20 = vpop.f32.mrb[36].mxu0  ;;  %v1189_v23 = vmax.f32 %v1127_v16, 0.0 }
 0x13e   :  { %v2077_v21 = vpop.f32.mrb[37].mxu0 }
 0x13f   :  { %v1190_v24 = vmax.f32 %v1130_v19, 0.0  ;;  %v2078_v25 = vadd.f32 %v2077_v21, %v2076_v20  ;;  %v2079_v27 = vpop.f32.mrb[38].mxu0  ;;  %v2183_v30 = vpop.f32.mrb[36].mxu1 }
 0x140   :  { %v2080_v28 = vpop.f32.mrb[39].mxu0  ;;  %v1142_v63 = vpop.f32.mrb[37].mxu1 }
 0x141   :  { %v1205_v31 = vpack.c.bf16 %v1190_v24, %v1189_v23  ;;  %v1038_v32 = vadd.f32 %v2078_v25, %v2861_v18  ;;  %v2081_v33 = vadd.f32 %v2080_v28, %v2079_v27  ;;  %v2184_v34 = vpop.f32.mrb[38].mxu1 }
 0x142   :  { %v1145_v4 = vpop.f32.mrb[39].mxu1 }
 0x143   :  { %v1135_v35 = vadd.f32 %v2179_v10, %v1038_v32  ;;  %v1041_v37 = vadd.f32 %v2081_v33, %v2866_v22  ;;  %2209 = vmatprep.mubr.bf16.mxu1 %v1205_v31 }
 0x145   :  { %v1138_v38 = vadd.f32 %v2180_v15, %v1041_v37  ;;  %v2082_v39 = vpop.f32.mrb[40].mxu0  ;;  %v1191_v42 = vmax.f32 %v1135_v35, 0.0 }
 0x146   :  { %v2083_v41 = vpop.f32.mrb[41].mxu0 }
 0x147   :  { %v1192_v43 = vmax.f32 %v1138_v38, 0.0  ;;  %v2084_v45 = vadd.f32 %v2083_v41, %v2082_v39  ;;  %v2085_v46 = vpop.f32.mrb[42].mxu0  ;;  %v2187_v49 = vpop.f32.mrb[40].mxu1 }
 0x148   :  { %v2086_v48 = vpop.f32.mrb[43].mxu0  ;;  %v1158_v53 = vpop.f32.mrb[41].mxu1 }
 0x149   :  { %v1206_v51 = vpack.c.bf16 %v1192_v43, %v1191_v42  ;;  %v2087_v52 = vadd.f32 %v2086_v48, %v2085_v46  ;;  %v1046_v18 = vadd.f32 %v2084_v45, %v2873_v36  ;;  %v2188_v55 = vpop.f32.mrb[42].mxu1 }
 0x14a   :  { %v1161_v58 = vpop.f32.mrb[43].mxu1 }
 0x14b   :  { %v1143_v56 = vadd.f32 %v1142_v63, %v1046_v18  ;;  %2210 = vmatmul.mubr.bf16.vlgmr.msra.gmra.mrb[48].mxu1 %v1206_v51  ;;  %v1049_v22 = vadd.f32 %v2087_v52, %v2878_v40 }
 0x14d   :  { %v1146_v59 = vadd.f32 %v1145_v4, %v1049_v22  ;;  %v2088_v60 = vpop.f32.mrb[44].mxu0  ;;  %v1193_v62 = vmax.f32 %v1143_v56, 0.0 }
 0x14e   :  { %v2089_v61 = vpop.f32.mrb[45].mxu0 }
 0x14f   :  { %v1194_v1 = vmax.f32 %v1146_v59, 0.0  ;;  %v2090_v2 = vadd.f32 %v2089_v61, %v2088_v60  ;;  %v2091_v5 = vpop.f32.mrb[46].mxu0  ;;  %v2916_v7 = vpop.f32.mrb[44].mxu1 }
 0x150   :  { %v2092_v6 = vpop.f32.mrb[47].mxu0  ;;  %v1174_v12 = vpop.f32.mrb[45].mxu1 }
 0x151   :  { %v1207_v9 = vpack.c.bf16 %v1194_v1, %v1193_v62  ;;  %v1054_v36 = vadd.f32 %v2090_v2, %v2882_v54  ;;  %v2093_v10 = vadd.f32 %v2092_v6, %v2091_v5  ;;  %v2192_v13 = vpop.f32.mrb[46].mxu1 }
 0x152   :  { %v1177_v15 = vpop.f32.mrb[47].mxu1 }
 0x153   :  { %v1151_v14 = vadd.f32 %v2183_v30, %v1054_v36  ;;  %v1057_v40 = vadd.f32 %v2093_v10, %v2884_v57  ;;  %2213 = vmatprep.mubr.bf16.mxu1 %v1207_v9 }
 0x155   :  { %v1154_v16 = vadd.f32 %v2184_v34, %v1057_v40  ;;  %v2094_v50 = vpop.f32.mrb[48].mxu0  ;;  %v1195_v19 = vmax.f32 %v1151_v14, 0.0  ;;  %v2437_v14 = vld [vmem:[%s3021_s7 + $0x18] sm:$0xff]   ;;  %v2438_v40 = vld [vmem:[%s3021_s7 + $0x20] sm:$0xff]  }
 0x156   :  { %v2095_v17 = vpop.f32.mrb[49].mxu0 }
 0x157   :  { %v1196_v20 = vmax.f32 %v1154_v16, 0.0  ;;  %v2096_v21 = vadd.f32 %v2095_v17, %v2094_v50  ;;  %v2097_v23 = vpop.f32.mrb[50].mxu0  ;;  %v1899_v16 = vld [vmem:[%s3022_s4] ss:$0 sm:$0xff] }
 0x158   :  { %v2098_v24 = vpop.f32.mrb[51].mxu0 }
 0x159   :  { %v2099_v25 = vadd.f32 %v2098_v24, %v2097_v23  ;;  %v1062_v27 = vadd.f32 %v2096_v21, %v2888_v8  ;;  %v1208_v54 = vpack.c.bf16 %v1196_v20, %v1195_v19 }
 0x15b   :  { %v1159_v28 = vadd.f32 %v1158_v53, %v1062_v27  ;;  %2214 = vmatmul.mubr.bf16.gmra.mrb[52].mxu1 %v1208_v54  ;;  %v1065_v30 = vadd.f32 %v2099_v25, %v2890_v11 }
 0x15d   :  { %v1162_v31 = vadd.f32 %v1161_v58, %v1065_v30  ;;  %v2100_v57 = vpop.f32.mrb[52].mxu0  ;;  %v1197_v33 = vmax.f32 %v1159_v28, 0.0 }
 0x15e   :  { %v2101_v32 = vpop.f32.mrb[53].mxu0 }
 0x15f   :  { %v1198_v63 = vmax.f32 %v1162_v31, 0.0  ;;  %v2102_v34 = vadd.f32 %v2101_v32, %v2100_v57  ;;  %v2103_v35 = vpop.f32.mrb[54].mxu0 }
 0x160   :  { %v2104_v37 = vpop.f32.mrb[55].mxu0 }
 0x161   :  { %v1209_v4 = vpack.c.bf16 %v1198_v63, %v1197_v33  ;;  %v1070_v38 = vadd.f32 %v2102_v34, %v2894_v26  ;;  %v2105_v39 = vadd.f32 %v2104_v37, %v2103_v35 }
 0x163   :  { %v1167_v41 = vadd.f32 %v2187_v49, %v1070_v38  ;;  %v1073_v8 = vadd.f32 %v2105_v39, %v2896_v29  ;;  %2217 = vmatprep.mubr.bf16.mxu1 %v1209_v4 }
 0x165   :  { %v1170_v42 = vadd.f32 %v2188_v55, %v1073_v8  ;;  %v2106_v43 = vpop.f32.mrb[56].mxu0  ;;  %v1199_v11 = vmax.f32 %v1167_v41, 0.0 }
 0x166   :  { %v2107_v45 = vpop.f32.mrb[57].mxu0 }
 0x167   :  { %v1200_v46 = vmax.f32 %v1170_v42, 0.0  ;;  %v2108_v48 = vadd.f32 %v2107_v45, %v2106_v43  ;;  %v2109_v51 = vpop.f32.mrb[58].mxu0 }
 0x168   :  { %v2110_v52 = vpop.f32.mrb[59].mxu0 }
 0x169   :  { %v2111_v18 = vadd.f32 %v2110_v52, %v2109_v51  ;;  %v1078_v53 = vadd.f32 %v2108_v48, %v2900_v44  ;;  %v1210_v56 = vpack.c.bf16 %v1200_v46, %v1199_v11 }
 0x16b   :  { %v1175_v22 = vadd.f32 %v1174_v12, %v1078_v53  ;;  %2218 = vmatmul.mubr.bf16.gmra.mrb[56].mxu1 %v1210_v56  ;;  %v1081_v26 = vadd.f32 %v2111_v18, %v2902_v47  ;;  %v2432_v12 = vld [vmem:[%s3020_s5 + $0x30] sm:$0xff]  }
 0x16c   :  { %2237 = vmatprep.subr.bf16.mxu0 %v2432_v12 }
 0x16d   :  { %v1178_v49 = vadd.f32 %v1177_v15, %v1081_v26  ;;  %v2112_v58 = vpop.f32.mrb[60].mxu0  ;;  %v1201_v59 = vmax.f32 %v1175_v22, 0.0  ;;  %2238 = vmatpush3.bf16.msra.mxu0 %v2432_v12  ;;  %v2439_v15 = vld [vmem:[%s3021_s7 + $0x28] sm:$0xff]  }
 0x16e   :  { %v2113_v29 = vpop.f32.mrb[61].mxu0 }
 0x16f   :  { %v1202_v55 = vmax.f32 %v1178_v49, 0.0  ;;  %v2114_v60 = vadd.f32 %v2113_v29, %v2112_v58  ;;  %v2115_v61 = vpop.f32.mrb[62].mxu0 }
 0x170   :  { %v2116_v62 = vpop.f32.mrb[63].mxu0 }
 0x171   :  { %v1211_v1 = vpack.c.bf16 %v1202_v55, %v1201_v59  ;;  %v1086_v2 = vadd.f32 %v2114_v60, %v2906_v0  ;;  %v2117_v5 = vadd.f32 %v2116_v62, %v2115_v61  ;;  %v2433_v0 = vld [vmem:[%s3020_s5 + $0x38] sm:$0xff]  }
 0x172   :  { %2239 = vmatprep.subr.bf16.mxu0 %v2433_v0 }
 0x173   :  { %v1183_v6 = vadd.f32 %v2916_v7, %v1086_v2  ;;  %v1089_v44 = vadd.f32 %v2117_v5, %v2908_v3  ;;  %2221 = vmatprep.mubr.bf16.mxu1 %v1211_v1  ;;  %2240 = vmatpush3.bf16.msra.mxu0 %v2433_v0  ;;  %v2434_v3 = vld [vmem:[%s3021_s7] sm:$0xff]   ;;  %v2435_v7 = vld [vmem:[%s3021_s7 + $0x8] sm:$0xff]   ;;  %v2440_v0 = vld [vmem:[%s3021_s7 + $0x30] sm:$0xff]  }
 0x174   :  { %2257 = vmatprep.subr.bf16.mxu1 %v2434_v3 }
 0x175   :  { %v1186_v9 = vadd.f32 %v2192_v13, %v1089_v44  ;;  %v1203_v36 = vmax.f32 %v1183_v6, 0.0  ;;  %2258 = vmatpush3.bf16.msra.mxu1 %v2434_v3  ;;  %v2436_v13 = vld [vmem:[%s3021_s7 + $0x10] sm:$0xff]   ;;  %v2441_v3 = vld [vmem:[%s3021_s7 + $0x38] sm:$0xff]  }
 0x176   :  { %2259 = vmatprep.subr.bf16.mxu1 %v2435_v7 }
 0x177   :  { %v1204_v47 = vmax.f32 %v1186_v9, 0.0 }
 0x179   :  { %v1212_v10 = vpack.c.bf16 %v1204_v47, %v1203_v36  ;;  %2260 = vmatpush3.bf16.msra.mxu1 %v2435_v7  ;;  %v1908_v7 = vld [vmem:[%s3023_s6] ss:$0 sm:$0xff] }
 0x17a   :  { %2261 = vmatprep.subr.bf16.mxu1 %v2436_v13 }
 0x17b   :  { %2222 = vmatmul.mubr.bf16.gmra.mrb[60].mxu1 %v1212_v10 }
 0x17d   :  { %2262 = vmatpush3.bf16.msra.mxu1 %v2436_v13 }
 0x17e   :  { %2263 = vmatprep.subr.bf16.mxu1 %v2437_v14 }
 0x181   :  { %2264 = vmatpush3.bf16.msra.mxu1 %v2437_v14 }
 0x182   :  { %2265 = vmatprep.subr.bf16.mxu1 %v2438_v40 }
 0x185   :  { %2266 = vmatpush3.bf16.msra.mxu1 %v2438_v40 }
 0x186   :  { %2267 = vmatprep.subr.bf16.mxu1 %v2439_v15 }
 0x189   :  { %2268 = vmatpush3.bf16.msra.mxu1 %v2439_v15 }
 0x18a   :  { %2269 = vmatprep.subr.bf16.mxu1 %v2440_v0 }
 0x18d   :  { %2270 = vmatpush3.bf16.msra.mxu1 %v2440_v0 }
 0x18e   :  { %2271 = vmatprep.subr.bf16.mxu1 %v2441_v3 }
 0x191   :  { %2272 = vmatpush3.bf16.msra.mxu1 %v2441_v3 }
 0x21e   :  { %v2211_v50 = vpop.f32.mrb[48].mxu1 }
 0x21f   :  { %v1327_v17 = vadd.f32 %v2211_v50, %v1899_v16  ;;  %v1318_v19 = vpop.f32.mrb[49].mxu1 }
 0x220   :  { %v1319_v20 = vadd.f32 %v1899_v16, %v1318_v19  ;;  %v2212_v21 = vpop.f32.mrb[50].mxu1 }
 0x221   :  { %v1330_v23 = vadd.f32 %v2212_v21, %v1899_v16  ;;  %v1321_v24 = vpop.f32.mrb[51].mxu1  ;;  %v1383_v27 = vmax.f32 %v1327_v17, 0.0 }
 0x222   :  { %v1322_v25 = vadd.f32 %v1899_v16, %v1321_v24  ;;  %v1381_v28 = vmax.f32 %v1319_v20, 0.0 }
 0x223   :  { %v1384_v54 = vmax.f32 %v1330_v23, 0.0 }
 0x224   :  { %v1382_v30 = vmax.f32 %v1322_v25, 0.0 }
 0x225   :  { %v1398_v31 = vpack.c.bf16 %v1384_v54, %v1383_v27 }
 0x226   :  { %v1397_v57 = vpack.c.bf16 %v1382_v30, %v1381_v28 }
 0x228   :  { %2241 = vmatprep.mubr.bf16.mxu0 %v1397_v57 }
 0x229   :  { %2242 = vmatmul.mubr.bf16.vlgmr.msra.gmra.mrb[64].mxu0 %v1398_v31 }
 0x22e   :  { %v2215_v32 = vpop.f32.mrb[52].mxu1 }
 0x22f   :  { %v1343_v33 = vadd.f32 %v2215_v32, %v1899_v16  ;;  %v1334_v63 = vpop.f32.mrb[53].mxu1 }
 0x230   :  { %v1335_v34 = vadd.f32 %v1899_v16, %v1334_v63  ;;  %v2216_v35 = vpop.f32.mrb[54].mxu1 }
 0x231   :  { %v1346_v37 = vadd.f32 %v2216_v35, %v1899_v16  ;;  %v1337_v4 = vpop.f32.mrb[55].mxu1  ;;  %v1387_v39 = vmax.f32 %v1343_v33, 0.0 }
 0x232   :  { %v1338_v38 = vadd.f32 %v1899_v16, %v1337_v4  ;;  %v1385_v8 = vmax.f32 %v1335_v34, 0.0 }
 0x233   :  { %v1388_v41 = vmax.f32 %v1346_v37, 0.0 }
 0x234   :  { %v1386_v42 = vmax.f32 %v1338_v38, 0.0 }
 0x235   :  { %v1400_v43 = vpack.c.bf16 %v1388_v41, %v1387_v39 }
 0x236   :  { %v1399_v45 = vpack.c.bf16 %v1386_v42, %v1385_v8 }
 0x238   :  { %2245 = vmatprep.mubr.bf16.mxu0 %v1399_v45 }
 0x239   :  { %2246 = vmatmul.mubr.bf16.gmra.mrb[68].mxu0 %v1400_v43 }
 0x23e   :  { %v2219_v11 = vpop.f32.mrb[56].mxu1 }
 0x23f   :  { %v1359_v46 = vadd.f32 %v2219_v11, %v1899_v16  ;;  %v1350_v48 = vpop.f32.mrb[57].mxu1 }
 0x240   :  { %v1351_v51 = vadd.f32 %v1899_v16, %v1350_v48  ;;  %v2220_v52 = vpop.f32.mrb[58].mxu1 }
 0x241   :  { %v1362_v18 = vadd.f32 %v2220_v52, %v1899_v16  ;;  %v1353_v53 = vpop.f32.mrb[59].mxu1  ;;  %v1391_v22 = vmax.f32 %v1359_v46, 0.0 }
 0x242   :  { %v1354_v56 = vadd.f32 %v1899_v16, %v1353_v53  ;;  %v1389_v49 = vmax.f32 %v1351_v51, 0.0 }
 0x243   :  { %v1392_v26 = vmax.f32 %v1362_v18, 0.0 }
 0x244   :  { %v1390_v58 = vmax.f32 %v1354_v56, 0.0 }
 0x245   :  { %v1402_v29 = vpack.c.bf16 %v1392_v26, %v1391_v22 }
 0x246   :  { %v1401_v59 = vpack.c.bf16 %v1390_v58, %v1389_v49 }
 0x248   :  { %2249 = vmatprep.mubr.bf16.mxu0 %v1401_v59 }
 0x249   :  { %2250 = vmatmul.mubr.bf16.gmra.mrb[72].mxu0 %v1402_v29 }
 0x24e   :  { %v2223_v55 = vpop.f32.mrb[60].mxu1 }
 0x24f   :  { %v1375_v60 = vadd.f32 %v2223_v55, %v1899_v16  ;;  %v1366_v61 = vpop.f32.mrb[61].mxu1 }
 0x250   :  { %v1367_v62 = vadd.f32 %v1899_v16, %v1366_v61  ;;  %v2224_v1 = vpop.f32.mrb[62].mxu1 }
 0x251   :  { %v1378_v2 = vadd.f32 %v2224_v1, %v1899_v16  ;;  %v1369_v5 = vpop.f32.mrb[63].mxu1  ;;  %v1395_v44 = vmax.f32 %v1375_v60, 0.0 }
 0x252   :  { %v1370_v6 = vadd.f32 %v1899_v16, %v1369_v5  ;;  %v1393_v36 = vmax.f32 %v1367_v62, 0.0 }
 0x253   :  { %v1396_v9 = vmax.f32 %v1378_v2, 0.0 }
 0x254   :  { %v1394_v47 = vmax.f32 %v1370_v6, 0.0 }
 0x255   :  { %v1404_v10 = vpack.c.bf16 %v1396_v9, %v1395_v44  ;;  %v1917_v9 = vld [vmem:[%s3024_s8] ss:$0 sm:$0xff] }
 0x256   :  { %v1403_v12 = vpack.c.bf16 %v1394_v47, %v1393_v36 }
 0x258   :  { %2253 = vmatprep.mubr.bf16.mxu0 %v1403_v12 }
 0x259   :  { %2254 = vmatmul.mubr.bf16.gmra.mrb[76].mxu0 %v1404_v10 }
 0x2fc   :  { %v2243_v13 = vpop.f32.mrb[64].mxu0 }
 0x2fd   :  { %v1519_v14 = vadd.f32 %v2243_v13, %v1908_v7  ;;  %v1510_v40 = vpop.f32.mrb[65].mxu0 }
 0x2fe   :  { %v1511_v15 = vadd.f32 %v1908_v7, %v1510_v40  ;;  %v2244_v16 = vpop.f32.mrb[66].mxu0 }
 0x2ff   :  { %v1522_v50 = vadd.f32 %v2244_v16, %v1908_v7  ;;  %v1513_v17 = vpop.f32.mrb[67].mxu0  ;;  %v1575_v20 = vmax.f32 %v1519_v14, 0.0 }
 0x300   :  { %v1514_v19 = vadd.f32 %v1908_v7, %v1513_v17  ;;  %v1573_v23 = vmax.f32 %v1511_v15, 0.0 }
 0x301   :  { %v1576_v21 = vmax.f32 %v1522_v50, 0.0 }
 0x302   :  { %v1574_v24 = vmax.f32 %v1514_v19, 0.0 }
 0x303   :  { %v1590_v25 = vpack.c.bf16 %v1576_v21, %v1575_v20 }
 0x304   :  { %v1589_v27 = vpack.c.bf16 %v1574_v24, %v1573_v23 }
 0x306   :  { %2273 = vmatprep.mubr.bf16.mxu1 %v1589_v27 }
 0x307   :  { %2274 = vmatmul.mubr.bf16.vlgmr.msra.gmra.mrb[64].mxu1 %v1590_v25 }
 0x30c   :  { %v2247_v54 = vpop.f32.mrb[68].mxu0 }
 0x30d   :  { %v1535_v28 = vadd.f32 %v2247_v54, %v1908_v7  ;;  %v1526_v30 = vpop.f32.mrb[69].mxu0 }
 0x30e   :  { %v1527_v31 = vadd.f32 %v1908_v7, %v1526_v30  ;;  %v2248_v57 = vpop.f32.mrb[70].mxu0 }
 0x30f   :  { %v1538_v32 = vadd.f32 %v2248_v57, %v1908_v7  ;;  %v1529_v33 = vpop.f32.mrb[71].mxu0  ;;  %v1579_v34 = vmax.f32 %v1535_v28, 0.0 }
 0x310   :  { %v1530_v63 = vadd.f32 %v1908_v7, %v1529_v33  ;;  %v1577_v37 = vmax.f32 %v1527_v31, 0.0 }
 0x311   :  { %v1580_v35 = vmax.f32 %v1538_v32, 0.0 }
 0x312   :  { %v1578_v4 = vmax.f32 %v1530_v63, 0.0 }
 0x313   :  { %v1592_v38 = vpack.c.bf16 %v1580_v35, %v1579_v34 }
 0x314   :  { %v1591_v39 = vpack.c.bf16 %v1578_v4, %v1577_v37 }
 0x316   :  { %2277 = vmatprep.mubr.bf16.mxu1 %v1591_v39 }
 0x317   :  { %2278 = vmatmul.mubr.bf16.gmra.mrb[68].mxu1 %v1592_v38 }
 0x31c   :  { %v2251_v41 = vpop.f32.mrb[72].mxu0 }
 0x31d   :  { %v1551_v8 = vadd.f32 %v2251_v41, %v1908_v7  ;;  %v1542_v42 = vpop.f32.mrb[73].mxu0 }
 0x31e   :  { %v1543_v43 = vadd.f32 %v1908_v7, %v1542_v42  ;;  %v2252_v45 = vpop.f32.mrb[74].mxu0 }
 0x31f   :  { %v1554_v11 = vadd.f32 %v2252_v45, %v1908_v7  ;;  %v1545_v46 = vpop.f32.mrb[75].mxu0  ;;  %v1583_v51 = vmax.f32 %v1551_v8, 0.0 }
 0x320   :  { %v1546_v48 = vadd.f32 %v1908_v7, %v1545_v46  ;;  %v1581_v18 = vmax.f32 %v1543_v43, 0.0 }
 0x321   :  { %v1584_v52 = vmax.f32 %v1554_v11, 0.0 }
 0x322   :  { %v1582_v53 = vmax.f32 %v1546_v48, 0.0 }
 0x323   :  { %v1594_v56 = vpack.c.bf16 %v1584_v52, %v1583_v51 }
 0x324   :  { %v1593_v22 = vpack.c.bf16 %v1582_v53, %v1581_v18 }
 0x326   :  { %2281 = vmatprep.mubr.bf16.mxu1 %v1593_v22 }
 0x327   :  { %2282 = vmatmul.mubr.bf16.gmra.mrb[72].mxu1 %v1594_v56 }
 0x32c   :  { %v2255_v26 = vpop.f32.mrb[76].mxu0 }
 0x32d   :  { %v1567_v49 = vadd.f32 %v2255_v26, %v1908_v7  ;;  %v1558_v58 = vpop.f32.mrb[77].mxu0 }
 0x32e   :  { %v1559_v29 = vadd.f32 %v1908_v7, %v1558_v58  ;;  %v2256_v59 = vpop.f32.mrb[78].mxu0 }
 0x32f   :  { %v1570_v55 = vadd.f32 %v2256_v59, %v1908_v7  ;;  %v1561_v60 = vpop.f32.mrb[79].mxu0  ;;  %v1587_v62 = vmax.f32 %v1567_v49, 0.0 }
 0x330   :  { %v1562_v61 = vadd.f32 %v1908_v7, %v1561_v60  ;;  %v1585_v2 = vmax.f32 %v1559_v29, 0.0 }
 0x331   :  { %v1588_v1 = vmax.f32 %v1570_v55, 0.0 }
 0x332   :  { %v1586_v5 = vmax.f32 %v1562_v61, 0.0 }
 0x333   :  { %v1596_v6 = vpack.c.bf16 %v1588_v1, %v1587_v62 }
 0x334   :  { %v1595_v44 = vpack.c.bf16 %v1586_v5, %v1585_v2 }
 0x336   :  { %2285 = vmatprep.mubr.bf16.mxu1 %v1595_v44 }
 0x337   :  { %2286 = vmatmul.mubr.bf16.gmra.mrb[76].mxu1 %v1596_v6 }
 0x3da   :  { %v2275_v36 = vpop.f32.mrb[64].mxu1 }
 0x3db   :  { %v1711_v47 = vadd.f32 %v2275_v36, %v1917_v9  ;;  %v1702_v10 = vpop.f32.mrb[65].mxu1 }
 0x3dc   :  { %v1703_v12 = vadd.f32 %v1917_v9, %v1702_v10  ;;  %v2276_v0 = vpop.f32.mrb[66].mxu1 }
 0x3dd   :  { %1767 = vst [vmem:[%s3025_s9 + $0x10] sm:$0xff] %v1711_v47  ;;  %v1714_v3 = vadd.f32 %v2276_v0, %v1917_v9  ;;  %v1705_v7 = vpop.f32.mrb[67].mxu1 }
 0x3de   :  { %1765 = vst [vmem:[%s3025_s9] sm:$0xff] %v1703_v12  ;;  %v1706_v13 = vadd.f32 %v1917_v9, %v1705_v7 }
 0x3df   :  { %1768 = vst [vmem:[%s3025_s9 + $0x18] sm:$0xff] %v1714_v3 }
 0x3e0   :  { %1766 = vst [vmem:[%s3025_s9 + $0x8] sm:$0xff] %v1706_v13 }
 0x3ea   :  { %v2279_v14 = vpop.f32.mrb[68].mxu1 }
 0x3eb   :  { %v1727_v40 = vadd.f32 %v2279_v14, %v1917_v9  ;;  %v1718_v15 = vpop.f32.mrb[69].mxu1 }
 0x3ec   :  { %v1719_v16 = vadd.f32 %v1917_v9, %v1718_v15  ;;  %v2280_v50 = vpop.f32.mrb[70].mxu1 }
 0x3ed   :  { %1771 = vst [vmem:[%s3025_s9 + $0x30] sm:$0xff] %v1727_v40  ;;  %v1730_v17 = vadd.f32 %v2280_v50, %v1917_v9  ;;  %v1721_v19 = vpop.f32.mrb[71].mxu1 }
 0x3ee   :  { %1769 = vst [vmem:[%s3025_s9 + $0x20] sm:$0xff] %v1719_v16  ;;  %v1722_v20 = vadd.f32 %v1917_v9, %v1721_v19 }
 0x3ef   :  { %1772 = vst [vmem:[%s3025_s9 + $0x38] sm:$0xff] %v1730_v17 }
 0x3f0   :  { %1770 = vst [vmem:[%s3025_s9 + $0x28] sm:$0xff] %v1722_v20 }
 0x3fa   :  { %v2283_v21 = vpop.f32.mrb[72].mxu1 }
 0x3fb   :  { %v1743_v23 = vadd.f32 %v2283_v21, %v1917_v9  ;;  %v1734_v24 = vpop.f32.mrb[73].mxu1 }
 0x3fc   :  { %v1735_v25 = vadd.f32 %v1917_v9, %v1734_v24  ;;  %v2284_v27 = vpop.f32.mrb[74].mxu1 }
 0x3fd   :  { %1775 = vst [vmem:[%s3025_s9 + $0x50] sm:$0xff] %v1743_v23  ;;  %v1746_v54 = vadd.f32 %v2284_v27, %v1917_v9  ;;  %v1737_v28 = vpop.f32.mrb[75].mxu1 }
 0x3fe   :  { %1773 = vst [vmem:[%s3025_s9 + $0x40] sm:$0xff] %v1735_v25  ;;  %v1738_v30 = vadd.f32 %v1917_v9, %v1737_v28 }
 0x3ff   :  { %1776 = vst [vmem:[%s3025_s9 + $0x58] sm:$0xff] %v1746_v54 }
 0x400   :  { %1774 = vst [vmem:[%s3025_s9 + $0x48] sm:$0xff] %v1738_v30 }
 0x40a   :  { %v2287_v31 = vpop.f32.mrb[76].mxu1 }
 0x40b   :  { %v1759_v57 = vadd.f32 %v2287_v31, %v1917_v9  ;;  %v1750_v32 = vpop.f32.mrb[77].mxu1 }
 0x40c   :  { %v1751_v33 = vadd.f32 %v1917_v9, %v1750_v32  ;;  %v2288_v63 = vpop.f32.mrb[78].mxu1 }
 0x40d   :  { %1779 = vst [vmem:[%s3025_s9 + $0x70] sm:$0xff] %v1759_v57  ;;  %v1762_v34 = vadd.f32 %v2288_v63, %v1917_v9  ;;  %v1753_v35 = vpop.f32.mrb[79].mxu1 }
 0x40e   :  { %1777 = vst [vmem:[%s3025_s9 + $0x60] sm:$0xff] %v1751_v33  ;;  %v1754_v37 = vadd.f32 %v1917_v9, %v1753_v35 }
 0x40f   :  { %1780 = vst [vmem:[%s3025_s9 + $0x78] sm:$0xff] %v1762_v34 }
 0x410   :  { %1778 = vst [vmem:[%s3025_s9 + $0x68] sm:$0xff] %v1754_v37 }

</bundles_post_ra>
